<compile_context>
chip_gen: v5e
topology: v5e:2x2
jax: 0.10.0
libtpu: 0.0.40
codegen_flags: <defaults>
</compile_context>

<pallas_src>
import functools

import jax
import jax.numpy as jnp
from jax import lax
from jax.experimental import pallas as pl
from jax.experimental.pallas import tpu as pltpu


def _res_block_kernel(x_ref, w1_ref, b1_ref, w2_ref, b2_ref, o_ref, *,
                      rows_per_image):
    """Fused conv1(+BN+ReLU6) -> conv2(+BN); one MXU matmul per conv.

    Packed activation layout: slab row r of image n holds image rows 2r and 2r+1
    side by side in lanes, so the lane width is 2*W*C (=128 here) and every load,
    store, and MXU operand is lane-dense / unmasked.

    x_ref : (R, 2*W*Cin)         R = N*H//2 packed rows (whole batch, one step)
    w1_ref: (4*W*Cin, 2*W*Cmid)  packed block-Toeplitz weights (BN1 scale folded)
    b1_ref: (1, 2*W*Cmid)        folded BN1 bias tiled over (row-parity, w)
    w2_ref: (4*W*Cmid, 2*W*Cout)
    b2_ref: (1, 2*W*Cout)
    o_ref : (R, 2*W*Cout)
    """
    Hp = rows_per_image                       # packed rows per image
    R = x_ref.shape[0]
    row = lax.broadcasted_iota(jnp.int32, (R, 1), 0)
    is_top = (row % Hp) == 0                  # packed row holds image rows 0, 1
    is_bot = (row % Hp) == (Hp - 1)           # packed row holds image rows H-2, H-1

    def conv(x, w, b):
        # x: (R, 2*WC). Build the (R, 4*WC) K-slab holding image rows
        # [2r, 2r+1, 2r-1, 2r+2] and do a single K = 4*WC MXU push.
        wc = x.shape[1] // 2
        up = pltpu.roll(x, shift=1, axis=0)[:, wc:2 * wc]       # image row 2r-1
        up = jnp.where(is_top, 0.0, up)                         # vertical SAME pad (top)
        dn = pltpu.roll(x, shift=R - 1, axis=0)[:, 0:wc]        # image row 2r+2
        dn = jnp.where(is_bot, 0.0, dn)                         # vertical SAME pad (bottom)
        slab = jnp.concatenate([x, up, dn], axis=1)             # (R, 4*WC)
        return jnp.dot(slab, w, preferred_element_type=jnp.float32) + b

    x = x_ref[...].astype(jnp.float32)
    y1 = jnp.clip(conv(x, w1_ref[...], b1_ref[...]), 0.0, 6.0)  # ReLU6
    o_ref[...] = conv(y1, w2_ref[...], b2_ref[...]).astype(o_ref.dtype)


def _fold_conv_bn_packed(w_oihw, scale, bias, W):
    """Fold BN into the conv and build the packed block-Toeplitz weight matrix.

    Matmul performed in-kernel:  out_packed = slab @ Bp + bias_row
      slab row r lane groups (each W*Cin wide):  [row 2r, row 2r+1, row 2r-1, row 2r+2]
      out  row r lane groups (each W*Cout wide): [row 2r, row 2r+1]
    Horizontal SAME padding is encoded in the Toeplitz structure (out-of-range kw
    taps are simply absent); vertical SAME padding is the in-kernel halo masking.
    """
    Cout, Cin, KH, KW = w_oihw.shape
    assert KH == 3 and KW == 3, "packed Toeplitz layout assumes 3x3 kernels"
    Ph, Pw = KH // 2, KW // 2
    WCi, WCo = W * Cin, W * Cout

    # taps[kh, kw, c, m] = w[m, c, kh, kw] * bn_scale[m]
    taps = (jnp.transpose(w_oihw, (2, 3, 1, 0)) *
            scale[None, None, None, :]).astype(jnp.float32)

    # Per-kh horizontal Toeplitz blocks Bh[kh] : (W*Cin, W*Cout)
    #   Bh[kh, w_in*Cin + c, w_out*Cout + m] = taps[kh, kw, c, m], kw = w_in - w_out + Pw
    Bh = jnp.zeros((KH, WCi, WCo), jnp.float32)
    for kw in range(KW):
        S = jnp.eye(W, W, k=Pw - kw, dtype=jnp.float32)   # w_in == w_out + kw - Pw
        Bh = Bh + jnp.einsum('uv,hcm->hucvm', S, taps[:, kw]).reshape(KH, WCi, WCo)

    # Pack two output rows per slab row. Slab lane-group g holds image row 2r + d_g.
    d_of_group = (0, 1, -1, 2)
    Bp = jnp.zeros((4 * WCi, 2 * WCo), jnp.float32)
    for g, d in enumerate(d_of_group):
        for s in range(2):                                # output image row 2r + s
            kh = d - s + Ph
            if 0 <= kh < KH:
                Bp = Bp.at[g * WCi:(g + 1) * WCi, s * WCo:(s + 1) * WCo].set(Bh[kh])

    b_row = jnp.tile(bias.astype(jnp.float32), (2 * W,)).reshape(1, 2 * WCo)
    return Bp, b_row


def prepare_res_block_params(params, W):
    """One-time (param-load time) prep: fold BN and build packed Toeplitz weights.

    Hoisted out of the per-call path (perf review): the eye/einsum build costs
    more than the kernel itself if re-done every forward.
    """
    B1, b1 = _fold_conv_bn_packed(params["w1"], params["scale1"], params["bias1"], W)
    B2, b2 = _fold_conv_bn_packed(params["w2"], params["scale2"], params["bias2"], W)
    # VMEM guard: packed weights are ~4*(W*C)^2 f32 per conv and do not scale to
    # large EfficientViT layers. TODO(synk): tile W with a halo for large layers.
    assert (B1.size + B2.size) * 4 < 16 * 1024 * 1024, "Toeplitz weights too large; tile W"
    return {"B1": B1, "b1": b1, "B2": B2, "b2": b2}


@jax.jit
def res_block_forward(x_nchw, prepared):
    """ResBlock forward (NCHW in / NCHW out), eval-mode BN, stride=1, 3x3 SAME."""
    N, Cin, H, W = x_nchw.shape
    assert H % 2 == 0, "row-packed layout assumes even H"
    B1, b1, B2, b2 = prepared["B1"], prepared["b1"], prepared["B2"], prepared["b2"]
    Cmid = b1.shape[1] // (2 * W)
    Cout = b2.shape[1] // (2 * W)
    Hp = H // 2
    R = N * Hp

    # NCHW -> NHWC -> (R, 2*W*Cin): lane-dense, two image rows packed per slab row.
    # The reshape is free; the tiny transpose fuses under this jit.
    x_m = jnp.transpose(x_nchw, (0, 2, 3, 1)).reshape(R, 2 * W * Cin)

    kernel = functools.partial(_res_block_kernel, rows_per_image=Hp)
    out_m = pl.pallas_call(
        kernel,
        out_shape=jax.ShapeDtypeStruct((R, 2 * W * Cout), x_nchw.dtype),
        # Single step, whole batch, no grid: zero per-step pipeline overhead on
        # single-TC v5e/v6e; at this size it also beats a 2-way core split on v7x.
        in_specs=[pl.BlockSpec(memory_space=pltpu.MemorySpace.VMEM)] * 5,
        out_specs=pl.BlockSpec(memory_space=pltpu.MemorySpace.VMEM),
    )(x_m, B1, b1, B2, b2)

    # (R, 2*W*Cout) -> NCHW (reshape free; transpose fuses under jit).
    return jnp.transpose(out_m.reshape(N, H, W, Cout), (0, 3, 1, 2))


# ----------------------- parameters & pure-JAX reference -----------------------

def _fold_bn(gamma, beta, mean, var, eps=1e-5):
    scale = gamma / jnp.sqrt(var + eps)
    bias = beta - mean * scale
    return scale, bias


def init_params(key, in_ch, mid_ch, out_ch, k=3):
    ks = jax.random.split(key, 10)
    w1 = 0.1 * jax.random.normal(ks[0], (mid_ch, in_ch, k, k), jnp.float32)
    w2 = 0.1 * jax.random.normal(ks[1], (out_ch, mid_ch, k, k), jnp.float32)
    g1 = 1.0 + 0.1 * jax.random.normal(ks[2], (mid_ch,), jnp.float32)
    b1 = 0.1 * jax.random.normal(ks[3], (mid_ch,), jnp.float32)
    m1 = 0.1 * jax.random.normal(ks[4], (mid_ch,), jnp.float32)
    v1 = jnp.abs(jax.random.normal(ks[5], (mid_ch,), jnp.float32)) + 0.5
    g2 = 1.0 + 0.1 * jax.random.normal(ks[6], (out_ch,), jnp.float32)
    b2 = 0.1 * jax.random.normal(ks[7], (out_ch,), jnp.float32)
    m2 = 0.1 * jax.random.normal(ks[8], (out_ch,), jnp.float32)
    v2 = jnp.abs(jax.random.normal(ks[9], (out_ch,), jnp.float32)) + 0.5
    s1, bb1 = _fold_bn(g1, b1, m1, v1)
    s2, bb2 = _fold_bn(g2, b2, m2, v2)
    return {"w1": w1, "scale1": s1, "bias1": bb1,
            "w2": w2, "scale2": s2, "bias2": bb2}


def _ref_conv_bn_act(x_nchw, w, scale, bias, clip6):
    y = lax.conv_general_dilated(
        x_nchw, w, window_strides=(1, 1), padding="SAME",
        dimension_numbers=("NCHW", "OIHW", "NCHW"))
    y = y * scale[None, :, None, None] + bias[None, :, None, None]
    if clip6:
        y = jnp.clip(y, 0.0, 6.0)
    return y


def _ref_res_block(x_nchw, p):
    y = _ref_conv_bn_act(x_nchw, p["w1"], p["scale1"], p["bias1"], True)
    y = _ref_conv_bn_act(y, p["w2"], p["scale2"], p["bias2"], False)
    return y


if __name__ == "__main__":
    key = jax.random.PRNGKey(0)
    kx, kp = jax.random.split(key)

    N, C, H, W = 2, 4, 16, 16            # NCHW input, PyTorch convention
    in_ch = mid_ch = out_ch = C          # expand_ratio=1 defaults
    x = jax.random.normal(kx, (N, C, H, W), jnp.float32)
    params = init_params(kp, in_ch, mid_ch, out_ch)

    prepared = prepare_res_block_params(params, W)   # one-time, param-load-time prep

    out = jax.block_until_ready(res_block_forward(x, prepared))
    ref = jax.block_until_ready(_ref_res_block(x, params))

    assert out.shape == (N, out_ch, H, W)
    assert jnp.allclose(out, ref, atol=5e-4, rtol=5e-4), "mismatch vs reference conv"

    print("KERNEL_OK")
</pallas_src>

<mosaic_0001>
module attributes {stable_mosaic.version = 11 : i64} {
  func.func @_res_block_kernel(%arg0: memref<16x128xf32, #tpu.memory_space<vmem>>, %arg1: memref<256x128xf32, #tpu.memory_space<vmem>>, %arg2: memref<1x128xf32, #tpu.memory_space<vmem>>, %arg3: memref<256x128xf32, #tpu.memory_space<vmem>>, %arg4: memref<1x128xf32, #tpu.memory_space<vmem>>, %arg5: memref<16x128xf32, #tpu.memory_space<vmem>>) attributes {dimension_semantics = [], scalar_prefetch = 0 : i64, scratch_operands = 0 : i64, tpu.core_type = #tpu.core_type<tc>} {
    %0 = tpu.iota {dimensions = array<i32: 0>} : vector<16x1xi32>
    %c8_i32 = arith.constant 8 : i32
    %c0_i32 = arith.constant 0 : i32
    %1 = arith.cmpi eq, %c8_i32, %c0_i32 : i32
    %c1_i32 = arith.constant 1 : i32
    %2 = arith.select %1, %c1_i32, %c8_i32 : i32
    %3 = vector.broadcast %2 : i32 to vector<16x1xi32>
    %4 = arith.remsi %0, %3 : vector<16x1xi32>
    %c0_i32_0 = arith.constant 0 : i32
    %5 = vector.broadcast %c0_i32_0 : i32 to vector<16x1xi32>
    %6 = arith.cmpi ne, %4, %5 : vector<16x1xi32>
    %c0_i32_1 = arith.constant 0 : i32
    %7 = vector.broadcast %c0_i32_1 : i32 to vector<16x1xi32>
    %8 = arith.cmpi slt, %4, %7 : vector<16x1xi32>
    %c0_i32_2 = arith.constant 0 : i32
    %9 = arith.cmpi slt, %2, %c0_i32_2 : i32
    %10 = vector.broadcast %9 : i1 to vector<16x1xi1>
    %11 = vector.broadcast %10 : vector<16x1xi1> to vector<16x1xi1>
    %12 = arith.xori %8, %11 : vector<16x1xi1>
    %13 = arith.andi %12, %6 : vector<16x1xi1>
    %14 = vector.broadcast %2 : i32 to vector<16x1xi32>
    %15 = arith.addi %4, %14 : vector<16x1xi32>
    %16 = arith.select %13, %15, %4 : vector<16x1xi1>, vector<16x1xi32>
    %c0_i32_3 = arith.constant 0 : i32
    %17 = vector.broadcast %c0_i32_3 : i32 to vector<16x1xi32>
    %18 = arith.cmpi eq, %16, %17 : vector<16x1xi32>
    %c8_i32_4 = arith.constant 8 : i32
    %c0_i32_5 = arith.constant 0 : i32
    %19 = arith.cmpi eq, %c8_i32_4, %c0_i32_5 : i32
    %c1_i32_6 = arith.constant 1 : i32
    %20 = arith.select %19, %c1_i32_6, %c8_i32_4 : i32
    %21 = vector.broadcast %20 : i32 to vector<16x1xi32>
    %22 = arith.remsi %0, %21 : vector<16x1xi32>
    %c0_i32_7 = arith.constant 0 : i32
    %23 = vector.broadcast %c0_i32_7 : i32 to vector<16x1xi32>
    %24 = arith.cmpi ne, %22, %23 : vector<16x1xi32>
    %c0_i32_8 = arith.constant 0 : i32
    %25 = vector.broadcast %c0_i32_8 : i32 to vector<16x1xi32>
    %26 = arith.cmpi slt, %22, %25 : vector<16x1xi32>
    %c0_i32_9 = arith.constant 0 : i32
    %27 = arith.cmpi slt, %20, %c0_i32_9 : i32
    %28 = vector.broadcast %27 : i1 to vector<16x1xi1>
    %29 = vector.broadcast %28 : vector<16x1xi1> to vector<16x1xi1>
    %30 = arith.xori %26, %29 : vector<16x1xi1>
    %31 = arith.andi %30, %24 : vector<16x1xi1>
    %32 = vector.broadcast %20 : i32 to vector<16x1xi32>
    %33 = arith.addi %22, %32 : vector<16x1xi32>
    %34 = arith.select %31, %33, %22 : vector<16x1xi1>, vector<16x1xi32>
    %c7_i32 = arith.constant 7 : i32
    %35 = vector.broadcast %c7_i32 : i32 to vector<16x1xi32>
    %36 = arith.cmpi eq, %34, %35 : vector<16x1xi32>
    %c0 = arith.constant 0 : index
    %c0_10 = arith.constant 0 : index
    %37 = vector.load %arg0[%c0, %c0_10] : memref<16x128xf32, #tpu.memory_space<vmem>>, vector<16x128xf32>
    %c0_11 = arith.constant 0 : index
    %c0_12 = arith.constant 0 : index
    %38 = vector.load %arg1[%c0_11, %c0_12] : memref<256x128xf32, #tpu.memory_space<vmem>>, vector<256x128xf32>
    %c0_13 = arith.constant 0 : index
    %c0_14 = arith.constant 0 : index
    %39 = vector.load %arg2[%c0_13, %c0_14] : memref<1x128xf32, #tpu.memory_space<vmem>>, vector<1x128xf32>
    %c1_i32_15 = arith.constant 1 : i32
    %40 = tpu.dynamic_rotate %37 by %c1_i32_15 dim 0 : vector<16x128xf32>, i32 -> vector<16x128xf32>
    %41 = vector.extract_strided_slice %40 {offsets = [0, 64], sizes = [16, 64], strides = [1, 1]} : vector<16x128xf32> to vector<16x64xf32>
    %cst = arith.constant 0.000000e+00 : f32
    %42 = vector.shape_cast %18 : vector<16x1xi1> to vector<16x1xi1>
    %43 = vector.broadcast %42 : vector<16x1xi1> to vector<16x64xi1>
    %44 = vector.broadcast %cst : f32 to vector<16x64xf32>
    %45 = arith.select %43, %44, %41 : vector<16x64xi1>, vector<16x64xf32>
    %c15_i32 = arith.constant 15 : i32
    %46 = tpu.dynamic_rotate %37 by %c15_i32 dim 0 : vector<16x128xf32>, i32 -> vector<16x128xf32>
    %47 = vector.extract_strided_slice %46 {offsets = [0, 0], sizes = [16, 64], strides = [1, 1]} : vector<16x128xf32> to vector<16x64xf32>
    %cst_16 = arith.constant 0.000000e+00 : f32
    %48 = vector.shape_cast %36 : vector<16x1xi1> to vector<16x1xi1>
    %49 = vector.broadcast %48 : vector<16x1xi1> to vector<16x64xi1>
    %50 = vector.broadcast %cst_16 : f32 to vector<16x64xf32>
    %51 = arith.select %49, %50, %47 : vector<16x64xi1>, vector<16x64xf32>
    %52 = tpu.concatenate %37, %45, %51 in 1 : vector<16x128xf32>, vector<16x64xf32>, vector<16x64xf32> -> vector<16x256xf32>
    %cst_17 = arith.constant dense<0.000000e+00> : vector<16x128xf32>
    %53 = tpu.matmul %52, %38, %cst_17 {dimension_numbers = #tpu.dot_dimension_numbers<[1], [0], [0], [1], [0, 0, 1, 1], [], []>} : vector<16x256xf32>, vector<256x128xf32>, vector<16x128xf32> -> vector<16x128xf32>
    %54 = vector.broadcast %39 : vector<1x128xf32> to vector<16x128xf32>
    %55 = arith.addf %53, %54 : vector<16x128xf32>
    %cst_18 = arith.constant 0.000000e+00 : f32
    %cst_19 = arith.constant 6.000000e+00 : f32
    %56 = vector.broadcast %cst_18 : f32 to vector<16x128xf32>
    %57 = arith.maximumf %56, %55 : vector<16x128xf32>
    %58 = vector.broadcast %cst_19 : f32 to vector<16x128xf32>
    %59 = arith.minimumf %58, %57 : vector<16x128xf32>
    %c0_20 = arith.constant 0 : index
    %c0_21 = arith.constant 0 : index
    %60 = vector.load %arg3[%c0_20, %c0_21] : memref<256x128xf32, #tpu.memory_space<vmem>>, vector<256x128xf32>
    %c0_22 = arith.constant 0 : index
    %c0_23 = arith.constant 0 : index
    %61 = vector.load %arg4[%c0_22, %c0_23] : memref<1x128xf32, #tpu.memory_space<vmem>>, vector<1x128xf32>
    %c1_i32_24 = arith.constant 1 : i32
    %62 = tpu.dynamic_rotate %59 by %c1_i32_24 dim 0 : vector<16x128xf32>, i32 -> vector<16x128xf32>
    %63 = vector.extract_strided_slice %62 {offsets = [0, 64], sizes = [16, 64], strides = [1, 1]} : vector<16x128xf32> to vector<16x64xf32>
    %cst_25 = arith.constant 0.000000e+00 : f32
    %64 = vector.shape_cast %18 : vector<16x1xi1> to vector<16x1xi1>
    %65 = vector.broadcast %64 : vector<16x1xi1> to vector<16x64xi1>
    %66 = vector.broadcast %cst_25 : f32 to vector<16x64xf32>
    %67 = arith.select %65, %66, %63 : vector<16x64xi1>, vector<16x64xf32>
    %c15_i32_26 = arith.constant 15 : i32
    %68 = tpu.dynamic_rotate %59 by %c15_i32_26 dim 0 : vector<16x128xf32>, i32 -> vector<16x128xf32>
    %69 = vector.extract_strided_slice %68 {offsets = [0, 0], sizes = [16, 64], strides = [1, 1]} : vector<16x128xf32> to vector<16x64xf32>
    %cst_27 = arith.constant 0.000000e+00 : f32
    %70 = vector.shape_cast %36 : vector<16x1xi1> to vector<16x1xi1>
    %71 = vector.broadcast %70 : vector<16x1xi1> to vector<16x64xi1>
    %72 = vector.broadcast %cst_27 : f32 to vector<16x64xf32>
    %73 = arith.select %71, %72, %69 : vector<16x64xi1>, vector<16x64xf32>
    %74 = tpu.concatenate %59, %67, %73 in 1 : vector<16x128xf32>, vector<16x64xf32>, vector<16x64xf32> -> vector<16x256xf32>
    %cst_28 = arith.constant dense<0.000000e+00> : vector<16x128xf32>
    %75 = tpu.matmul %74, %60, %cst_28 {dimension_numbers = #tpu.dot_dimension_numbers<[1], [0], [0], [1], [0, 0, 1, 1], [], []>} : vector<16x256xf32>, vector<256x128xf32>, vector<16x128xf32> -> vector<16x128xf32>
    %76 = vector.broadcast %61 : vector<1x128xf32> to vector<16x128xf32>
    %77 = arith.addf %75, %76 : vector<16x128xf32>
    %c0_29 = arith.constant 0 : index
    %c0_30 = arith.constant 0 : index
    %78 = vector.load %arg5[%c0_29, %c0_30] : memref<16x128xf32, #tpu.memory_space<vmem>>, vector<16x128xf32>
    tpu.vector_store %arg5[%c0_29, %c0_30], %77 {strides = array<i32>} : memref<16x128xf32, #tpu.memory_space<vmem>>, vector<16x128xf32>,
    return
  }
}

</mosaic_0001>

<bundles_post_ra>
// kernel: res_block_forward.1
= control target key start
LH: loop header
LB: loop body
LE: loop exit
PB: predicated region body
PF: predicated region fallthrough
CT: control target
= control target key end

     0   :  { %v20_v0 = vlaneseq  ;;  %s321_s18 = smov 64   ;;  %vm124_vm6 = vcmask 523264   ;;  %s634_s0 = inlined_call_operand.vmem [shape: f32[16,128], index: 0, kind: input, shape index: {}]   ;;  %s635_s1 = inlined_call_operand.vmem [shape: f32[256,128], index: 1, kind: input, shape index: {}]   ;;  %s636_s2 = inlined_call_operand.vmem [shape: f32[1,128], index: 2, kind: input, shape index: {}]   ;;  %s637_s3 = inlined_call_operand.vmem [shape: f32[256,128], index: 3, kind: input, shape index: {}]   ;;  %s638_s4 = inlined_call_operand.vmem [shape: f32[1,128], index: 4, kind: input, shape index: {}]   ;;  %s639_s5 = inlined_call_operand.vmem [shape: f32[16,128], index: 5, kind: output, shape index: {}]  }
   0x1   :  { %v355_v1 = vld [vmem:[%s634_s0] sm:$0xff]  ;;  %v360_v2 = vld [vmem:[%s634_s0 + $0x8] sm:$0xff]  ;;  %v68_v3 = vld [vmem:[%s635_s1 + $0x78] sm:$0xff] }
   0x2   :  { %v365_v4 = vshrl.u32 %v20_v0, 7  ;;  %v86_v5 = vrot.slane %v355_v1, 7  ;;  %v87_v6 = vrot.slane %v360_v2, 7  ;;  %v97_v7 = vrot.slane %v355_v1, 1  ;;  %130 = vmatpush.msra.mxu0 %v68_v3  ;;  %v67_v8 = vld [vmem:[%s635_s1 + $0x70] sm:$0xff]  ;;  %v84_v9 = vld [vmem:[%s635_s1 + $0xf8] sm:$0xff] }
   0x3   :  { %v98_v10 = vrot.slane %v360_v2, 1  ;;  %153 = vmatpush.msra.mxu1 %v84_v9  ;;  %v66_v11 = vld [vmem:[%s635_s1 + $0x68] sm:$0xff]  ;;  %v83_v12 = vld [vmem:[%s635_s1 + $0xf0] sm:$0xff]  ;;  %v65_v18 = vld [vmem:[%s635_s1 + $0x60] sm:$0xff] }
   0x4   :  { %v27_v13 = vand.u32 7, %v365_v4  ;;  %vm88_vm0 = vcmp.lt.s32.totalorder %v365_v4, 1  ;;  %vm99_vm1 = vcmp.lt.s32.totalorder %v365_v4, 7  ;;  %v22_v14 = vadd.s32 8, %v365_v4  ;;  %131 = vmatpush.msra.mxu0 %v67_v8  ;;  %v82_v15 = vld [vmem:[%s635_s1 + $0xe8] sm:$0xff]  ;;  %v81_v22 = vld [vmem:[%s635_s1 + $0xe0] sm:$0xff] }
   0x5   :  { %v90_v16 = vsel %vm88_vm0, %v87_v6, %v86_v5  ;;  %v100_v17 = vsel %vm99_vm1, %v97_v7, %v98_v10  ;;  %154 = vmatpush.msra.mxu1 %v83_v12  ;;  %v89_v25 = vsel %vm88_vm0, %v86_v5, %v87_v6  ;;  %v64_v26 = vld [vmem:[%s635_s1 + $0x58] sm:$0xff]  ;;  %v101_v30 = vsel %vm99_vm1, %v98_v10, %v97_v7  ;;  %v63_v32 = vld [vmem:[%s635_s1 + $0x50] sm:$0xff]  ;;  %v62_v36 = vld [vmem:[%s635_s1 + $0x48] sm:$0xff] }
   0x6   :  { %vm397_vm2 = vcmp.eq.s32.totalorder %v27_v13, 0  ;;  %vm401_vm3 = vcmp.eq.s32.totalorder %v27_v13, 7  ;;  %v34_v21 = vand.u32 7, %v22_v14  ;;  %132 = vmatpush.msra.mxu0 %v66_v11  ;;  %v80_v31 = vld [vmem:[%s635_s1 + $0xd8] sm:$0xff]  ;;  %v79_v33 = vld [vmem:[%s635_s1 + $0xd0] sm:$0xff]  ;;  %v78_v37 = vld [vmem:[%s635_s1 + $0xc8] sm:$0xff] }
   0x7   :  { %v95_v23 = vsel %vm397_vm2, 0.0, %v90_v16  ;;  %v106_v24 = vsel %vm401_vm3, 0.0, %v100_v17  ;;  %155 = vmatpush.msra.mxu1 %v82_v15  ;;  %v61_v38 = vld [vmem:[%s635_s1 + $0x40] sm:$0xff]  ;;  %v60_v41 = vld [vmem:[%s635_s1 + $0x38] sm:$0xff]  ;;  %v59_v43 = vld [vmem:[%s635_s1 + $0x30] sm:$0xff] }
   0x8   :  { %v299_v27 = vpack.i.bf16 %v106_v24, %v95_v23  ;;  %vm417_vm4 = vcmp.eq.s32.totalorder %v34_v21, 0  ;;  %vm421_vm5 = vcmp.eq.s32.totalorder %v34_v21, 7  ;;  %133 = vmatpush.msra.mxu0 %v65_v18  ;;  %v77_v40 = vld [vmem:[%s635_s1 + $0xc0] sm:$0xff]  ;;  %v76_v42 = vld [vmem:[%s635_s1 + $0xb8] sm:$0xff]  ;;  %v75_v44 = vld [vmem:[%s635_s1 + $0xb0] sm:$0xff] }
   0x9   :  { %156 = vmatpush.msra.mxu1 %v81_v22  ;;  %v96_v34 = vsel %vm417_vm4, 0.0, %v89_v25  ;;  %v107_v35 = vsel %vm421_vm5, 0.0, %v101_v30  ;;  %v58_v45 = vld [vmem:[%s635_s1 + $0x28] sm:$0xff]  ;;  %v57_v47 = vld [vmem:[%s635_s1 + $0x20] sm:$0xff]  ;;  %v56_v49 = vld [vmem:[%s635_s1 + $0x18] sm:$0xff] }
   0xa   :  { %300 = vrot.lane.b32.xlu0 %v299_v27, %s321_s18  ;;  %134 = vmatpush.msra.mxu0 %v64_v26  ;;  %v304_v39 = vpack.i.bf16 %v107_v35, %v96_v34  ;;  %v74_v46 = vld [vmem:[%s635_s1 + $0xa8] sm:$0xff]  ;;  %v73_v48 = vld [vmem:[%s635_s1 + $0xa0] sm:$0xff]  ;;  %v72_v50 = vld [vmem:[%s635_s1 + $0x98] sm:$0xff] }
   0xb   :  { %157 = vmatpush.msra.mxu1 %v80_v31  ;;  %v55_v51 = vld [vmem:[%s635_s1 + $0x10] sm:$0xff]  ;;  %v54_v53 = vld [vmem:[%s635_s1 + $0x8] sm:$0xff]  ;;  %v53_v54 = vld [vmem:[%s635_s1] sm:$0xff] }
   0xc   :  { %135 = vmatpush.msra.mxu0 %v63_v32  ;;  %v71_v52 = vld [vmem:[%s635_s1 + $0x90] sm:$0xff]  ;;  %v70_v55 = vld [vmem:[%s635_s1 + $0x88] sm:$0xff]  ;;  %v69_v56 = vld [vmem:[%s635_s1 + $0x80] sm:$0xff] }
   0xd   :  { %158 = vmatpush.msra.mxu1 %v79_v33  ;;  %v195_v57 = vld [vmem:[%s637_s3 + $0x78] sm:$0xff]  ;;  %v194_v58 = vld [vmem:[%s637_s3 + $0x70] sm:$0xff]  ;;  %v193_v59 = vld [vmem:[%s637_s3 + $0x68] sm:$0xff] }
   0xe   :  { %136 = vmatpush.msra.mxu0 %v62_v36  ;;  %246 = vmatpush.msra.mxu2 %v195_v57  ;;  %v192_v60 = vld [vmem:[%s637_s3 + $0x60] sm:$0xff]  ;;  %v191_v61 = vld [vmem:[%s637_s3 + $0x58] sm:$0xff]  ;;  %v190_v62 = vld [vmem:[%s637_s3 + $0x50] sm:$0xff] }
   0xf   :  { %159 = vmatpush.msra.mxu1 %v78_v37  ;;  %v189_v63 = vld [vmem:[%s637_s3 + $0x48] sm:$0xff]  ;;  %v188_v0 = vld [vmem:[%s637_s3 + $0x40] sm:$0xff]  ;;  %v183_v14 = vld [vmem:[%s637_s3 + $0x18] sm:$0xff] }
  0x10   :  { %137 = vmatpush.msra.mxu0 %v61_v38  ;;  %247 = vmatpush.msra.mxu2 %v194_v58  ;;  %v185_v3 = vld [vmem:[%s637_s3 + $0x28] sm:$0xff]  ;;  %v184_v13 = vld [vmem:[%s637_s3 + $0x20] sm:$0xff]  ;;  %v182_v15 = vld [vmem:[%s637_s3 + $0x10] sm:$0xff] }
  0x11   :  { %160 = vmatpush.msra.mxu1 %v77_v40  ;;  %v181_v16 = vld [vmem:[%s637_s3 + $0x8] sm:$0xff]  ;;  %v180_v17 = vld [vmem:[%s637_s3] sm:$0xff]  ;;  %v211_v23 = vld [vmem:[%s637_s3 + $0xf8] sm:$0xff] }
  0x12   :  { %305 = vrot.lane.b32.xlu0 %v304_v39, %s321_s18  ;;  %138 = vmatpush.msra.mxu0 %v60_v41  ;;  %v319_v21 = vld [vmem:[%s636_s2] ss:$0 sm:$0xff]  ;;  %v210_v24 = vld [vmem:[%s637_s3 + $0xf0] sm:$0xff]  ;;  %v209_v25 = vld [vmem:[%s637_s3 + $0xe8] sm:$0xff] }
  0x13   :  { %161 = vmatpush.msra.mxu1 %v76_v42  ;;  %248 = vmatpush.msra.mxu2 %v193_v59  ;;  %v208_v30 = vld [vmem:[%s637_s3 + $0xe0] sm:$0xff]  ;;  %v207_v33 = vld [vmem:[%s637_s3 + $0xd8] sm:$0xff]  ;;  %v206_v36 = vld [vmem:[%s637_s3 + $0xd0] sm:$0xff] }
  0x14   :  { %139 = vmatpush.msra.mxu0 %v59_v43  ;;  %269 = vmatpush.msra.mxu3 %v211_v23  ;;  %v205_v37 = vld [vmem:[%s637_s3 + $0xc8] sm:$0xff]  ;;  %v204_v40 = vld [vmem:[%s637_s3 + $0xc0] sm:$0xff]  ;;  %v203_v42 = vld [vmem:[%s637_s3 + $0xb8] sm:$0xff] }
  0x15   :  { %162 = vmatpush.msra.mxu1 %v75_v44  ;;  %249 = vmatpush.msra.mxu2 %v192_v60  ;;  %v202_v44 = vld [vmem:[%s637_s3 + $0xb0] sm:$0xff]  ;;  %v197_v4 = vld [vmem:[%s637_s3 + $0x88] sm:$0xff] }
  0x16   :  { %140 = vmatpush.msra.mxu0 %v58_v45  ;;  %270 = vmatpush.msra.mxu3 %v210_v24  ;;  %v198_v19 = vld [vmem:[%s637_s3 + $0x90] sm:$0xff] }
  0x17   :  { %163 = vmatpush.msra.mxu1 %v74_v46  ;;  %250 = vmatpush.msra.mxu2 %v191_v61  ;;  %v196_v61 = vld [vmem:[%s637_s3 + $0x80] sm:$0xff] }
  0x18   :  { %141 = vmatpush.msra.mxu0 %v57_v47  ;;  %271 = vmatpush.msra.mxu3 %v209_v25 }
  0x19   :  { %164 = vmatpush.msra.mxu1 %v73_v48  ;;  %251 = vmatpush.msra.mxu2 %v190_v62 }
  0x1a   :  { %142 = vmatpush.msra.mxu0 %v56_v49  ;;  %272 = vmatpush.msra.mxu3 %v208_v30  ;;  %v201_v49 = vld [vmem:[%s637_s3 + $0xa8] sm:$0xff] }
  0x1b   :  { %165 = vmatpush.msra.mxu1 %v72_v50  ;;  %252 = vmatpush.msra.mxu2 %v189_v63 }
  0x1c   :  { %143 = vmatpush.msra.mxu0 %v55_v51  ;;  %273 = vmatpush.msra.mxu3 %v207_v33 }
  0x1d   :  { %166 = vmatpush.msra.mxu1 %v71_v52  ;;  %253 = vmatpush.msra.mxu2 %v188_v0  ;;  %v200_v52 = vld [vmem:[%s637_s3 + $0xa0] sm:$0xff] }
  0x1e   :  { %144 = vmatpush.msra.mxu0 %v54_v53  ;;  %274 = vmatpush.msra.mxu3 %v206_v36 }
  0x1f   :  { %167 = vmatpush.msra.mxu1 %v70_v55 }
  0x20   :  { %145 = vmatpush.msra.mxu0 %v53_v54  ;;  %275 = vmatpush.msra.mxu3 %v205_v37 }
  0x21   :  { %146 = vmatmul.f32.vlgmr.msra.gmra.mxu0 %v355_v1  ;;  %168 = vmatpush.msra.mxu1 %v69_v56  ;;  %v187_v1 = vld [vmem:[%s637_s3 + $0x38] sm:$0xff] }
  0x22   :  { %254 = vmatpush.msra.mxu2 %v187_v1  ;;  %276 = vmatpush.msra.mxu3 %v204_v40  ;;  %v199_v56 = vld [vmem:[%s637_s3 + $0x98] sm:$0xff] }
  0x24   :  { %277 = vmatpush.msra.mxu3 %v203_v42 }
  0x26   :  { %278 = vmatpush.msra.mxu3 %v202_v44 }
  0x28   :  { %279 = vmatpush.msra.mxu3 %v201_v49 }
  0x29   :  { %149 = vmatmul.f32.gmra.mxu0 %v360_v2  ;;  %v186_v2 = vld [vmem:[%s637_s3 + $0x30] sm:$0xff] }
  0x2a   :  { %255 = vmatpush.msra.mxu2 %v186_v2  ;;  %280 = vmatpush.msra.mxu3 %v200_v52 }
  0x2c   :  { %256 = vmatpush.msra.mxu2 %v185_v3  ;;  %281 = vmatpush.msra.mxu3 %v199_v56 }
  0x2e   :  { %257 = vmatpush.msra.mxu2 %v184_v13  ;;  %282 = vmatpush.msra.mxu3 %v198_v19 }
  0x30   :  { %258 = vmatpush.msra.mxu2 %v183_v14  ;;  %283 = vmatpush.msra.mxu3 %v197_v4 }
  0x32   :  { %259 = vmatpush.msra.mxu2 %v182_v15  ;;  %284 = vmatpush.msra.mxu3 %v196_v61 }
  0x34   :  { %260 = vmatpush.msra.mxu2 %v181_v16 }
  0x36   :  { %261 = vmatpush.msra.mxu2 %v180_v17 }
  0x7c   :  { %v301_v5 = vpop.permute.xlu0 %300 }
  0x7d   :  { %v303_v6 = vunpack.i.h.bf16 %v301_v5  ;;  %v302_v7 = vunpack.i.l.bf16 %v301_v5 }
  0x7f   :  { %v125_v8 = vsel %vm124_vm6, %v302_v7, %v303_v6  ;;  %v320_v6 = vld [vmem:[%s638_s4] ss:$0 sm:$0xff] }
  0x80   :  { %169 = vmatmul.f32.vlgmr.msra.gmra.mxu1 %v125_v8 }
  0x84   :  { %v306_v9 = vpop.permute.xlu0 %305 }
  0x85   :  { %v308_v10 = vunpack.i.h.bf16 %v306_v9  ;;  %v307_v11 = vunpack.i.l.bf16 %v306_v9 }
  0x87   :  { %v126_v12 = vsel %vm124_vm6, %v307_v11, %v308_v10 }
  0x88   :  { %172 = vmatmul.f32.gmra.mxu1 %v126_v12 }
  0x9e   :  { %v147_v18 = vpop.f32.mrf.mxu0 }
  0x9f   :  { %v148_v22 = vadd.f32 %v319_v21, %v147_v18 }
  0xa6   :  { %v150_v31 = vpop.f32.mrf.mxu0 }
  0xa7   :  { %v151_v35 = vadd.f32 %v319_v21, %v150_v31 }
  0xfd   :  { %v170_v26 = vpop.f32.mrf.mxu1 }
  0xfe   :  { %v171_v27 = vadd.f32 %v170_v26, %v148_v22 }
 0x100   :  { %v176_v32 = vmax.f32 %v171_v27, 0.0 }
 0x102   :  { %v178_v34 = vmin.f32 %v176_v32, 6.0 }
 0x104   :  { %262 = vmatmul.f32.vlgmr.msra.gmra.mxu2 %v178_v34  ;;  %v213_v45 = vrot.slane %v178_v34, 7  ;;  %v219_v46 = vrot.slane %v178_v34, 1 }
 0x105   :  { %v173_v38 = vpop.f32.mrf.mxu1 }
 0x106   :  { %v174_v39 = vadd.f32 %v173_v38, %v151_v35 }
 0x108   :  { %v177_v41 = vmax.f32 %v174_v39, 0.0 }
 0x10a   :  { %v179_v43 = vmin.f32 %v177_v41, 6.0 }
 0x10c   :  { %v214_v47 = vrot.slane %v179_v43, 7  ;;  %v220_v48 = vrot.slane %v179_v43, 1  ;;  %265 = vmatmul.f32.gmra.mxu2 %v179_v43 }
 0x10e   :  { %v216_v50 = vsel %vm88_vm0, %v214_v47, %v213_v45  ;;  %v221_v51 = vsel %vm99_vm1, %v219_v46, %v220_v48  ;;  %v215_v57 = vsel %vm88_vm0, %v213_v45, %v214_v47  ;;  %v222_v58 = vsel %vm99_vm1, %v220_v48, %v219_v46 }
 0x10f   :  { %v217_v53 = vsel %vm397_vm2, 0.0, %v216_v50  ;;  %v223_v54 = vsel %vm401_vm3, 0.0, %v221_v51  ;;  %v218_v20 = vsel %vm417_vm4, 0.0, %v215_v57  ;;  %v224_v59 = vsel %vm421_vm5, 0.0, %v222_v58 }
 0x110   :  { %v309_v55 = vpack.i.bf16 %v223_v54, %v217_v53  ;;  %v314_v60 = vpack.i.bf16 %v224_v59, %v218_v20 }
 0x112   :  { %310 = vrot.lane.b32.xlu1 %v309_v55, %s321_s18 }
 0x11a   :  { %315 = vrot.lane.b32.xlu1 %v314_v60, %s321_s18 }
 0x184   :  { %v311_v62 = vpop.permute.xlu1 %310 }
 0x185   :  { %v313_v28 = vunpack.i.h.bf16 %v311_v62  ;;  %v312_v63 = vunpack.i.l.bf16 %v311_v62 }
 0x187   :  { %v241_v29 = vsel %vm124_vm6, %v312_v63, %v313_v28  ;;  %v263_v5 = vpop.f32.mrf.mxu2 }
 0x188   :  { %285 = vmatmul.f32.vlgmr.msra.gmra.mxu3 %v241_v29  ;;  %v264_v7 = vadd.f32 %v320_v6, %v263_v5 }
 0x18c   :  { %v316_v0 = vpop.permute.xlu1 %315 }
 0x18d   :  { %v318_v1 = vunpack.i.h.bf16 %v316_v0  ;;  %v317_v2 = vunpack.i.l.bf16 %v316_v0 }
 0x18f   :  { %v242_v3 = vsel %vm124_vm6, %v317_v2, %v318_v1  ;;  %v266_v10 = vpop.f32.mrf.mxu2 }
 0x190   :  { %288 = vmatmul.f32.gmra.mxu3 %v242_v3  ;;  %v267_v11 = vadd.f32 %v320_v6, %v266_v10 }
 0x20b   :  { %v286_v8 = vpop.f32.mrf.mxu3 }
 0x20c   :  { %v287_v9 = vadd.f32 %v286_v8, %v264_v7 }
 0x20e   :  { %292 = vst [vmem:[%s639_s5] sm:$0xff] %v287_v9 }
 0x213   :  { %v289_v12 = vpop.f32.mrf.mxu3 }
 0x214   :  { %v290_v13 = vadd.f32 %v289_v12, %v267_v11 }
 0x216   :  { %293 = vst [vmem:[%s639_s5 + $0x8] sm:$0xff] %v290_v13 }

</bundles_post_ra>
